<compile_context>
chip_gen: v6e
topology: v6e:2x2x1
jax: 0.10.0
libtpu: 0.0.40
codegen_flags: <defaults>
</compile_context>

<pallas_src>
import functools

import jax
import jax.numpy as jnp
from jax import lax
from jax.experimental import pallas as pl
from jax.experimental.pallas import tpu as pltpu


def _mlp_kernel(x_ref, w1_ref, b1_ref, w2_ref, b2_ref, w3_ref, b3_ref, o_ref,
                *, tb, total_rows):
    # fc1: cast operands to bf16 in-kernel (MXU), accumulate in f32.
    # Note: bf16 MXU operands are a documented approximation vs the f32
    # PyTorch forward (error << 2e-2 at these widths).
    h1 = jnp.dot(
        x_ref[...].astype(jnp.bfloat16),
        w1_ref[...].astype(jnp.bfloat16),
        preferred_element_type=jnp.float32,
    )
    h1 = jnp.maximum(h1 + b1_ref[...], 0.0)

    # fc2: bf16 operands, f32 accumulation.
    h2 = jnp.dot(
        h1.astype(jnp.bfloat16),
        w2_ref[...].astype(jnp.bfloat16),
        preferred_element_type=jnp.float32,
    )
    h2 = jnp.maximum(h2 + b2_ref[...], 0.0)

    # fc3 (out_features == 1): contract w3 (1, 32) against h2 (tb, 32) over the
    # feature dim so the logits come out lane-major as (1, tb) directly.
    logits = lax.dot_general(
        w3_ref[...], h2,
        dimension_numbers=(((1,), (1,)), ((), ())),
        preferred_element_type=jnp.float32,
    ) + b3_ref[...]                                    # (1, tb)
    sig = jax.nn.sigmoid(logits)                       # (1, tb), lane-dense

    # Ragged-tail mask: rows past `total_rows` were read OOB (unspecified
    # values); force them to 0 so the sliced-off region stays finite.
    row = pl.program_id(0) * tb + lax.broadcasted_iota(jnp.int32, (1, tb), 1)
    o_ref[...] = jnp.where(row < total_rows, sig, 0.0).astype(o_ref.dtype)


def _round_up(x, m):
    return (x + m - 1) // m * m


def gsp_anomaly_classifier(x, params, *, tb=None):
    """x: (B, input_dim) float32; params: dict of w1,b1,w2,b2,w3,b3.

    w1/w2 are (in, out); b1/b2 are (1, out); w3 is (1, 32); b3 is (1, 1).
    Returns (B, 1) float32 in [0, 1].
    """
    B, D = x.shape
    w1, b1 = params["w1"], params["b1"]
    w2, b2 = params["w2"], params["b2"]
    w3, b3 = params["w3"], params["b3"]

    # Tile sizing: target ~1 MiB of f32 x per grid step so the ~0.35 us
    # per-step overhead is amortized against DMA time (sized for v7x's
    # ~3.2 TB/s HBM; v5e/v6e hit their rooflines sooner and are not hurt).
    if tb is None:
        tb = _round_up(max(512, (1 << 20) // (D * 4)), 128)
    # Don't over-tile tiny batches (lane-dense output rows want multiples of 128).
    tb = _round_up(min(tb, _round_up(B, 128)), 128)
    # Keep >= 2 grid steps when the batch allows it so the "parallel" axis can
    # actually split across v7x's two TensorCores.
    if B > 256 and pl.cdiv(B, tb) < 2:
        tb = max(128, _round_up(pl.cdiv(B, 2), 128))
    num_tiles = pl.cdiv(B, tb)  # ragged last tile handled in-kernel (no jnp.pad)

    param_bytes = (w1.size + b1.size + w2.size + b2.size + w3.size + b3.size) * 4
    flops = 2 * B * (D * 64 + 64 * 32 + 32)
    bytes_accessed = B * D * 4 + param_bytes + num_tiles * tb * 4
    cost = pl.CostEstimate(
        flops=flops, transcendentals=B, bytes_accessed=bytes_accessed
    )

    # Right-size scoped VMEM: double-buffered x tile + output row, resident
    # weights, in-kernel bf16 copies and f32 intermediates, 2x headroom.
    per_step_bytes = (
        2 * tb * D * 4          # double-buffered x tiles (f32)
        + 2 * tb * 4            # double-buffered (1, tb) output rows
        + tb * D * 2            # bf16 x copy
        + tb * 64 * (4 + 2)     # h1 f32 + bf16
        + tb * 32 * 4           # h2 f32
        + 2 * param_bytes
    )
    vmem_limit = int(min(64 * 1024 * 1024, max(4 * 1024 * 1024, 2 * per_step_bytes)))

    out = pl.pallas_call(
        functools.partial(_mlp_kernel, tb=tb, total_rows=B),
        out_shape=jax.ShapeDtypeStruct((num_tiles, tb), jnp.float32),
        grid_spec=pltpu.PrefetchScalarGridSpec(
            num_scalar_prefetch=0,
            grid=(num_tiles,),
            in_specs=[
                pl.BlockSpec((tb, D), lambda i: (i, 0)),     # x tile (f32)
                pl.BlockSpec(w1.shape, lambda i: (0, 0)),    # w1 (D, 64)
                pl.BlockSpec(b1.shape, lambda i: (0, 0)),    # b1 (1, 64)
                pl.BlockSpec(w2.shape, lambda i: (0, 0)),    # w2 (64, 32)
                pl.BlockSpec(b2.shape, lambda i: (0, 0)),    # b2 (1, 32)
                pl.BlockSpec(w3.shape, lambda i: (0, 0)),    # w3 (1, 32)
                pl.BlockSpec(b3.shape, lambda i: (0, 0)),    # b3 (1, 1)
            ],
            out_specs=pl.BlockSpec((1, tb), lambda i: (i, 0)),  # lane-dense row
        ),
        compiler_params=pltpu.CompilerParams(
            dimension_semantics=("parallel",),
            vmem_limit_bytes=vmem_limit,
        ),
        cost_estimate=cost,
    )(x, w1, b1, w2, b2, w3, b3)

    # (num_tiles, tb) row-major == padded row order; slice back to B rows.
    return out.reshape(num_tiles * tb, 1)[:B]


def init_params(key, input_dim):
    """Deterministic synthetic parameters (shapes match the nn.Linear layers)."""
    k1, k2, k3, k4, k5, k6 = jax.random.split(key, 6)

    def uniform_fan_in(k, shape, fan_in):
        bound = 1.0 / jnp.sqrt(float(fan_in))
        return jax.random.uniform(k, shape, jnp.float32, -bound, bound)

    return {
        # fc1/fc2 stored as (in_features, out_features); PyTorch stores (out, in)
        "w1": uniform_fan_in(k1, (input_dim, 64), input_dim),
        "b1": uniform_fan_in(k2, (1, 64), input_dim),
        "w2": uniform_fan_in(k3, (64, 32), 64),
        "b2": uniform_fan_in(k4, (1, 32), 64),
        # fc3 kept as a (1, 32) row (matches PyTorch (out, in) for this layer)
        "w3": uniform_fan_in(k5, (1, 32), 32),
        "b3": uniform_fan_in(k6, (1, 1), 32),
    }


def _reference(x, p):
    """Pure f32 JAX reference of the PyTorch forward pass."""
    h1 = jnp.maximum(x @ p["w1"] + p["b1"], 0.0)
    h2 = jnp.maximum(h1 @ p["w2"] + p["b2"], 0.0)
    return jax.nn.sigmoid(h2 @ p["w3"].T + p["b3"])


if __name__ == "__main__":
    key = jax.random.PRNGKey(0)
    kx, kp, kx2 = jax.random.split(key, 3)

    input_dim = 32
    params = init_params(kp, input_dim)

    # Primary small-shape check (single ragged tile).
    B = 8
    x = jax.random.normal(kx, (B, input_dim), jnp.float32)
    out = jax.block_until_ready(gsp_anomaly_classifier(x, params))
    ref = _reference(x, params)
    assert out.shape == (B, 1)
    assert bool(jnp.all(jnp.isfinite(out)))
    # Tolerance accounts for bf16 MXU operands in fc1/fc2 (f32 accumulation).
    assert jnp.allclose(out, ref, atol=2e-2, rtol=0.0), "mismatch vs JAX reference"

    # Multi-tile + ragged-tail check (exercises the cdiv grid and output mask).
    B2 = 300
    x2 = jax.random.normal(kx2, (B2, input_dim), jnp.float32)
    out2 = jax.block_until_ready(gsp_anomaly_classifier(x2, params))
    ref2 = _reference(x2, params)
    assert out2.shape == (B2, 1)
    assert bool(jnp.all(jnp.isfinite(out2)))
    assert jnp.allclose(out2, ref2, atol=2e-2, rtol=0.0), "mismatch vs JAX reference"

    print("KERNEL_OK")
</pallas_src>

<mosaic_0001>
module attributes {stable_mosaic.version = 11 : i64} {
  func.func @_mlp_kernel(%arg0: i32, %arg1: memref<128x32xf32, #tpu.memory_space<vmem>>, %arg2: memref<32x64xf32, #tpu.memory_space<vmem>>, %arg3: memref<1x64xf32, #tpu.memory_space<vmem>>, %arg4: memref<64x32xf32, #tpu.memory_space<vmem>>, %arg5: memref<1x32xf32, #tpu.memory_space<vmem>>, %arg6: memref<1x32xf32, #tpu.memory_space<vmem>>, %arg7: memref<1x1xf32, #tpu.memory_space<vmem>>, %arg8: memref<1x128xf32, #tpu.memory_space<vmem>>) attributes {dimension_semantics = [#tpu.dimension_semantics<parallel>], iteration_bounds = array<i64: 1>, scalar_prefetch = 0 : i64, scratch_operands = 0 : i64, tpu.core_type = #tpu.core_type<tc>, window_params = [{transform_indices = @transform_0, window_bounds = array<i64: 128, 32>}, {pipeline_mode = #tpu.pipeline_mode<synchronous>, transform_indices = @transform_1, window_bounds = array<i64: 32, 64>}, {pipeline_mode = #tpu.pipeline_mode<synchronous>, transform_indices = @transform_2, window_bounds = array<i64: 1, 64>}, {pipeline_mode = #tpu.pipeline_mode<synchronous>, transform_indices = @transform_3, window_bounds = array<i64: 64, 32>}, {pipeline_mode = #tpu.pipeline_mode<synchronous>, transform_indices = @transform_4, window_bounds = array<i64: 1, 32>}, {pipeline_mode = #tpu.pipeline_mode<synchronous>, transform_indices = @transform_5, window_bounds = array<i64: 1, 32>}, {pipeline_mode = #tpu.pipeline_mode<synchronous>, transform_indices = @transform_6, window_bounds = array<i64: 1, 1>}, {transform_indices = @transform_7, window_bounds = array<i64: 1, 128>}]} {
    %c0 = arith.constant 0 : index
    %c0_0 = arith.constant 0 : index
    %0 = vector.load %arg1[%c0, %c0_0] : memref<128x32xf32, #tpu.memory_space<vmem>>, vector<128x32xf32>
    %1 = arith.truncf %0 : vector<128x32xf32> to vector<128x32xbf16>
    %c0_1 = arith.constant 0 : index
    %c0_2 = arith.constant 0 : index
    %2 = vector.load %arg2[%c0_1, %c0_2] : memref<32x64xf32, #tpu.memory_space<vmem>>, vector<32x64xf32>
    %3 = arith.truncf %2 : vector<32x64xf32> to vector<32x64xbf16>
    %cst = arith.constant dense<0.000000e+00> : vector<128x64xf32>
    %4 = tpu.matmul %1, %3, %cst {dimension_numbers = #tpu.dot_dimension_numbers<[1], [0], [0], [1], [0, 0, 1, 1], [], []>} : vector<128x32xbf16>, vector<32x64xbf16>, vector<128x64xf32> -> vector<128x64xf32>
    %c0_3 = arith.constant 0 : index
    %c0_4 = arith.constant 0 : index
    %5 = vector.load %arg3[%c0_3, %c0_4] : memref<1x64xf32, #tpu.memory_space<vmem>>, vector<1x64xf32>
    %6 = vector.broadcast %5 : vector<1x64xf32> to vector<128x64xf32>
    %7 = arith.addf %4, %6 : vector<128x64xf32>
    %cst_5 = arith.constant 0.000000e+00 : f32
    %8 = vector.broadcast %cst_5 : f32 to vector<128x64xf32>
    %9 = arith.maximumf %7, %8 : vector<128x64xf32>
    %10 = arith.truncf %9 : vector<128x64xf32> to vector<128x64xbf16>
    %c0_6 = arith.constant 0 : index
    %c0_7 = arith.constant 0 : index
    %11 = vector.load %arg4[%c0_6, %c0_7] : memref<64x32xf32, #tpu.memory_space<vmem>>, vector<64x32xf32>
    %12 = arith.truncf %11 : vector<64x32xf32> to vector<64x32xbf16>
    %cst_8 = arith.constant dense<0.000000e+00> : vector<128x32xf32>
    %13 = tpu.matmul %10, %12, %cst_8 {dimension_numbers = #tpu.dot_dimension_numbers<[1], [0], [0], [1], [0, 0, 1, 1], [], []>} : vector<128x64xbf16>, vector<64x32xbf16>, vector<128x32xf32> -> vector<128x32xf32>
    %c0_9 = arith.constant 0 : index
    %c0_10 = arith.constant 0 : index
    %14 = vector.load %arg5[%c0_9, %c0_10] : memref<1x32xf32, #tpu.memory_space<vmem>>, vector<1x32xf32>
    %15 = vector.broadcast %14 : vector<1x32xf32> to vector<128x32xf32>
    %16 = arith.addf %13, %15 : vector<128x32xf32>
    %cst_11 = arith.constant 0.000000e+00 : f32
    %17 = vector.broadcast %cst_11 : f32 to vector<128x32xf32>
    %18 = arith.maximumf %16, %17 : vector<128x32xf32>
    %c0_12 = arith.constant 0 : index
    %c0_13 = arith.constant 0 : index
    %19 = vector.load %arg6[%c0_12, %c0_13] : memref<1x32xf32, #tpu.memory_space<vmem>>, vector<1x32xf32>
    %cst_14 = arith.constant dense<0.000000e+00> : vector<1x128xf32>
    %20 = tpu.matmul %19, %18, %cst_14 {dimension_numbers = #tpu.dot_dimension_numbers<[1], [1], [0], [0], [0, 0, 1, 0], [], []>} : vector<1x32xf32>, vector<128x32xf32>, vector<1x128xf32> -> vector<1x128xf32>
    %c0_15 = arith.constant 0 : index
    %c0_16 = arith.constant 0 : index
    %21 = vector.load %arg7[%c0_15, %c0_16] : memref<1x1xf32, #tpu.memory_space<vmem>>, vector<1x1xf32>
    %22 = vector.broadcast %21 : vector<1x1xf32> to vector<1x128xf32>
    %23 = arith.addf %20, %22 : vector<1x128xf32>
    %24 = arith.negf %23 : vector<1x128xf32>
    %25 = math.exp %24 : vector<1x128xf32>
    %cst_17 = arith.constant 1.000000e+00 : f32
    %26 = vector.broadcast %cst_17 : f32 to vector<1x128xf32>
    %27 = arith.addf %26, %25 : vector<1x128xf32>
    %28 = arith.divf %26, %27 : vector<1x128xf32>
    %c128_i32 = arith.constant 128 : i32
    %29 = arith.muli %arg0, %c128_i32 : i32
    %30 = tpu.iota {dimensions = array<i32: 1>} : vector<1x128xi32>
    %31 = vector.broadcast %29 : i32 to vector<1x128xi32>
    %32 = arith.addi %31, %30 : vector<1x128xi32>
    %c8_i32 = arith.constant 8 : i32
    %33 = vector.broadcast %c8_i32 : i32 to vector<1x128xi32>
    %34 = arith.cmpi slt, %32, %33 : vector<1x128xi32>
    %cst_18 = arith.constant 0.000000e+00 : f32
    %35 = vector.broadcast %cst_18 : f32 to vector<1x128xf32>
    %36 = arith.select %34, %28, %35 : vector<1x128xi1>, vector<1x128xf32>
    %c0_19 = arith.constant 0 : index
    %c0_20 = arith.constant 0 : index
    %37 = vector.load %arg8[%c0_19, %c0_20] : memref<1x128xf32, #tpu.memory_space<vmem>>, vector<1x128xf32>
    tpu.vector_store %arg8[%c0_19, %c0_20], %36 {strides = array<i32>} : memref<1x128xf32, #tpu.memory_space<vmem>>, vector<1x128xf32>,
    return
  }
  func.func @transform_0(%arg0: i32) -> (i32, i32) {
    %c0_i32 = arith.constant 0 : i32
    %c0_i32_0 = arith.constant 0 : i32
    return %arg0, %c0_i32 : i32, i32
  }
  func.func @transform_1(%arg0: i32) -> (i32, i32) {
    %c0_i32 = arith.constant 0 : i32
    %c0_i32_0 = arith.constant 0 : i32
    %c0_i32_1 = arith.constant 0 : i32
    return %c0_i32, %c0_i32_0 : i32, i32
  }
  func.func @transform_2(%arg0: i32) -> (i32, i32) {
    %c0_i32 = arith.constant 0 : i32
    %c0_i32_0 = arith.constant 0 : i32
    %c0_i32_1 = arith.constant 0 : i32
    return %c0_i32, %c0_i32_0 : i32, i32
  }
  func.func @transform_3(%arg0: i32) -> (i32, i32) {
    %c0_i32 = arith.constant 0 : i32
    %c0_i32_0 = arith.constant 0 : i32
    %c0_i32_1 = arith.constant 0 : i32
    return %c0_i32, %c0_i32_0 : i32, i32
  }
  func.func @transform_4(%arg0: i32) -> (i32, i32) {
    %c0_i32 = arith.constant 0 : i32
    %c0_i32_0 = arith.constant 0 : i32
    %c0_i32_1 = arith.constant 0 : i32
    return %c0_i32, %c0_i32_0 : i32, i32
  }
  func.func @transform_5(%arg0: i32) -> (i32, i32) {
    %c0_i32 = arith.constant 0 : i32
    %c0_i32_0 = arith.constant 0 : i32
    %c0_i32_1 = arith.constant 0 : i32
    return %c0_i32, %c0_i32_0 : i32, i32
  }
  func.func @transform_6(%arg0: i32) -> (i32, i32) {
    %c0_i32 = arith.constant 0 : i32
    %c0_i32_0 = arith.constant 0 : i32
    %c0_i32_1 = arith.constant 0 : i32
    return %c0_i32, %c0_i32_0 : i32, i32
  }
  func.func @transform_7(%arg0: i32) -> (i32, i32) {
    %c0_i32 = arith.constant 0 : i32
    %c0_i32_0 = arith.constant 0 : i32
    return %arg0, %c0_i32 : i32, i32
  }
}

</mosaic_0001>

<bundles_post_ra>
// kernel: tpu_custom_call.1
= control target key start
LH: loop header
LB: loop body
LE: loop exit
PB: predicated region body
PF: predicated region fallthrough
CT: control target
= control target key end

     0   :  { %s917_s0 = inlined_call_operand.vmem [shape: f32[8,32], index: 0, kind: input, shape index: {}]   ;;  %s918_s1 = inlined_call_operand.vmem [shape: f32[32,64], index: 1, kind: input, shape index: {}]   ;;  %s919_s2 = inlined_call_operand.vmem [shape: f32[1,64], index: 2, kind: input, shape index: {}]   ;;  %s920_s3 = inlined_call_operand.vmem [shape: f32[64,32], index: 3, kind: input, shape index: {}]   ;;  %s921_s4 = inlined_call_operand.vmem [shape: f32[1,32], index: 4, kind: input, shape index: {}]   ;;  %s922_s5 = inlined_call_operand.vmem [shape: f32[1,32], index: 5, kind: input, shape index: {}]   ;;  %s923_s6 = inlined_call_operand.<no memory space> [shape: f32[1,1], index: 6, kind: input, shape index: {}]   ;;  %s924_s7 = inlined_call_operand.hbm [shape: f32[1,128], index: 7, kind: output, shape index: {}]  }
   0x1   :  { %v12_v0 = vstv %s923_s6 }
   0x2   :  { %13 = vst [vmem:[#allocation2] sm:$0x1] %v12_v0 }
   0x3   :  { %v56_v1 = vld [vmem:[%s918_s1 + $0x10] sm:$0xff]  ;;  %v57_v2 = vld [vmem:[%s918_s1 + $0x18] sm:$0xff]  ;;  %v54_v3 = vld [vmem:[%s918_s1] sm:$0xff]  ;;  %vm67_vm0 = vcmask 261120  }
   0x4   :  { %v59_v4 = vpack.c.bf16 %v57_v2, %v56_v1  ;;  %v55_v5 = vld [vmem:[%s918_s1 + $0x8] sm:$0xff]  ;;  %v30_v6 = vld [vmem:[%s917_s0] sm:$0xff]  ;;  %v32_v10 = vld [vmem:[%s917_s0 + $0x10] sm:$0xff] }
   0x5   :  { %v31_v7 = vld [vmem:[%s917_s0 + $0x8] sm:$0xff]  ;;  %v58_v8 = vpack.c.bf16 %v55_v5, %v54_v3  ;;  %v33_v11 = vld [vmem:[%s917_s0 + $0x18] sm:$0xff]  ;;  %v34_v12 = vld [vmem:[%s917_s0 + $0x20] sm:$0xff] }
   0x6   :  { %v46_v9 = vpack.c.bf16 %v31_v7, %v30_v6  ;;  %605 = vmatprep.subr.bf16.mxu1 %v59_v4  ;;  %v35_v13 = vld [vmem:[%s917_s0 + $0x28] sm:$0xff]  ;;  %v219_v14 = vld [vmem:[%s920_s3 + $0x30] sm:$0xff]  ;;  %v47_v15 = vpack.c.bf16 %v33_v11, %v32_v10  ;;  %v220_v16 = vld [vmem:[%s920_s3 + $0x38] sm:$0xff] }
   0x7   :  { %606 = vmatpush3.bf16.msra.mxu1 %v59_v4  ;;  %v217_v17 = vld [vmem:[%s920_s3 + $0x20] sm:$0xff]  ;;  %v218_v18 = vld [vmem:[%s920_s3 + $0x28] sm:$0xff]  ;;  %v48_v19 = vpack.c.bf16 %v35_v13, %v34_v12  ;;  %v224_v20 = vpack.c.bf16 %v220_v16, %v219_v14 }
   0x8   :  { %609 = vmatprep.mubr.msk.bf16.mxu1 %vm67_vm0, %v46_v9  ;;  %607 = vmatprep.subr.bf16.mxu1 %v58_v8 }
   0xb   :  { %608 = vmatpush3.bf16.msra.mxu1 %v58_v8 }
   0xc   :  { %14 = vsyncpa [#allocation4], 0  ;;  %v223_v21 = vpack.c.bf16 %v218_v18, %v217_v17  ;;  %625 = vmatprep.subr.bf16.mxu1 %v224_v20  ;;  %v215_v22 = vld [vmem:[%s920_s3 + $0x10] sm:$0xff]  ;;  %v216_v23 = vld [vmem:[%s920_s3 + $0x18] sm:$0xff]  ;;  %vm232_vm1 = vcmask 523264   ;;  %vm716_vm2 = vmmov 0  }
   0xd   :  { %v36_v24 = vld [vmem:[%s917_s0 + $0x30] sm:$0xff]  ;;  %v37_v25 = vld [vmem:[%s917_s0 + $0x38] sm:$0xff]  ;;  %v38_v26 = vld [vmem:[%s917_s0 + $0x40] sm:$0xff]  ;;  %v222_v28 = vpack.c.bf16 %v216_v23, %v215_v22  ;;  %s718_s11 = smov [#allocation3]  }
   0xe   :  { %610 = vmatmul.mubr.msk.bf16.vlgmr.msra.gmra.mxu1 %vm67_vm0, %v47_v15  ;;  %v39_v27 = vld [vmem:[%s917_s0 + $0x48] sm:$0xff]  ;;  %v49_v29 = vpack.c.bf16 %v37_v25, %v36_v24  ;;  %v40_v31 = vld [vmem:[%s917_s0 + $0x50] sm:$0xff]  ;;  %v41_v32 = vld [vmem:[%s917_s0 + $0x58] sm:$0xff]  ;;  %s522_s6 = sshll.u32 %s718_s11, 4  ;;  %s523_s6 = int_to_ptr.vmem [resolvable:$true] %s522_s6 }
   0xf   :  { %613 = vmatprep.mubr.msk.bf16.mxu1 %vm67_vm0, %v48_v19  ;;  %626 = vmatpush3.bf16.msra.mxu1 %v224_v20  ;;  %v50_v30 = vpack.c.bf16 %v39_v27, %v38_v26  ;;  %v42_v33 = vld [vmem:[%s917_s0 + $0x60] sm:$0xff]  ;;  %v43_v34 = vld [vmem:[%s917_s0 + $0x68] sm:$0xff]  ;;  %v51_v35 = vpack.c.bf16 %v41_v32, %v40_v31  ;;  %v44_v37 = vld [vmem:[%s917_s0 + $0x70] sm:$0xff]  ;;  %s697_s12 = scalar_lea.vmem %s523_s6, 32  ;;  %p698_p1 = scmp.lt.s32.totalorder %s523_s6, %s523_s6 }
  0x10   :  { %627 = vmatprep.subr.bf16.mxu1 %v223_v21  ;;  %v52_v36 = vpack.c.bf16 %v43_v34, %v42_v33  ;;  %v45_v38 = vld [vmem:[%s917_s0 + $0x78] sm:$0xff]  ;;  %v213_v40 = vld [vmem:[%s920_s3] sm:$0xff]  ;;  %v214_v41 = vld [vmem:[%s920_s3 + $0x8] sm:$0xff] }
  0x11   :  { %v53_v39 = vpack.c.bf16 %v45_v38, %v44_v37  ;;  %v221_v42 = vpack.c.bf16 %v214_v41, %v213_v40  ;;  %v530_v45 = vld [vmem:[%s919_s2] ss:$0 sm:$0xff]  ;;  %v717_v38 = vmov 0  }
  0x12   :  { %v371_v37 = vld [vmem:[#allocation2] sm:$0x1]  ;;  %688 = vset.pattern.permute.xlu0 %v717_v38 }
  0x13   :  { %628 = vmatpush3.bf16.msra.mxu1 %v223_v21  ;;  %374 = vperm.xlu0 %688, %v371_v37  }
  0x14   :  { %629 = vmatprep.subr.bf16.mxu1 %v222_v28 }
  0x16   :  { %614 = vmatmul.mubr.msk.bf16.gmra.mxu1 %vm67_vm0, %v49_v29 }
  0x17   :  { %617 = vmatprep.mubr.msk.bf16.mxu1 %vm67_vm0, %v50_v30  ;;  %630 = vmatpush3.bf16.msra.mxu1 %v222_v28 }
  0x18   :  { %631 = vmatprep.subr.bf16.mxu1 %v221_v42 }
  0x1b   :  { %632 = vmatpush3.bf16.msra.mxu1 %v221_v42 }
  0x1e   :  { %618 = vmatmul.mubr.msk.bf16.gmra.mxu1 %vm67_vm0, %v51_v35 }
  0x1f   :  { %621 = vmatprep.mubr.msk.bf16.mxu1 %vm67_vm0, %v52_v36  ;;  %v715_v36 = vmov 0.0  }
  0x20   :  { %649 = vmatprep.subr.mxu0 %v715_v36  ;;  %681 = vmatprep.mubr.msk.f32.mxu0 %vm716_vm2, %v715_v36 }
  0x26   :  { %622 = vmatmul.mubr.msk.bf16.gmra.mxu1 %vm67_vm0, %v53_v39 }
  0xce   :  { %v611_v43 = vpop.f32.mrf.mxu1 }
  0xcf   :  { %v135_v49 = vadd.f32 %v611_v43, %v530_v45 }
  0xd0   :  { %v126_v44 = vpop.f32.mrf.mxu1 }
  0xd1   :  { %v127_v47 = vadd.f32 %v530_v45, %v126_v44  ;;  %v191_v56 = vmax.f32 %v135_v49, 0.0 }
  0xd2   :  { %v612_v46 = vpop.f32.mrf.mxu1 }
  0xd3   :  { %v138_v48 = vadd.f32 %v612_v46, %v530_v45  ;;  %v189_v54 = vmax.f32 %v127_v47, 0.0 }
  0xd4   :  { %v129_v50 = vpop.f32.mrf.mxu1 }
  0xd5   :  { %v130_v51 = vadd.f32 %v530_v45, %v129_v50  ;;  %v192_v52 = vmax.f32 %v138_v48, 0.0 }
  0xd6   :  { %v615_v53 = vpop.f32.mrf.mxu1 }
  0xd7   :  { %v190_v55 = vmax.f32 %v130_v51, 0.0  ;;  %v206_v59 = vpack.c.bf16 %v192_v52, %v191_v56  ;;  %v151_v63 = vadd.f32 %v615_v53, %v530_v45  ;;  %v539_v53 = vld [vmem:[%s921_s4] ss:$0 sm:$0xff] }
  0xd8   :  { %v142_v57 = vpop.f32.mrf.mxu1 }
  0xd9   :  { %v205_v58 = vpack.c.bf16 %v190_v55, %v189_v54  ;;  %v143_v61 = vadd.f32 %v530_v45, %v142_v57  ;;  %v195_v6 = vmax.f32 %v151_v63, 0.0 }
  0xda   :  { %v616_v60 = vpop.f32.mrf.mxu1 }
  0xdb   :  { %v154_v62 = vadd.f32 %v616_v60, %v530_v45  ;;  %633 = vmatprep.mubr.msk.bf16.mxu1 %vm232_vm1, %v205_v58  ;;  %v193_v4 = vmax.f32 %v143_v61, 0.0 }
  0xdc   :  { %v145_v0 = vpop.f32.mrf.mxu1  ;;  %634 = vmatmul.mubr.msk.bf16.vlgmr.msra.gmra.mxu1 %vm232_vm1, %v206_v59 }
  0xdd   :  { %v146_v1 = vadd.f32 %v530_v45, %v145_v0  ;;  %v196_v2 = vmax.f32 %v154_v62, 0.0 }
  0xde   :  { %v619_v3 = vpop.f32.mrf.mxu1 }
  0xdf   :  { %v194_v5 = vmax.f32 %v146_v1, 0.0  ;;  %v208_v9 = vpack.c.bf16 %v196_v2, %v195_v6  ;;  %v167_v13 = vadd.f32 %v619_v3, %v530_v45 }
  0xe0   :  { %v158_v7 = vpop.f32.mrf.mxu1 }
  0xe1   :  { %v207_v8 = vpack.c.bf16 %v194_v5, %v193_v4  ;;  %v159_v11 = vadd.f32 %v530_v45, %v158_v7  ;;  %v199_v20 = vmax.f32 %v167_v13, 0.0 }
  0xe2   :  { %v620_v10 = vpop.f32.mrf.mxu1 }
  0xe3   :  { %v170_v12 = vadd.f32 %v620_v10, %v530_v45  ;;  %637 = vmatprep.mubr.msk.bf16.mxu1 %vm232_vm1, %v207_v8  ;;  %v197_v18 = vmax.f32 %v159_v11, 0.0 }
  0xe4   :  { %v161_v14 = vpop.f32.mrf.mxu1  ;;  %638 = vmatmul.mubr.msk.bf16.gmra.mxu1 %vm232_vm1, %v208_v9 }
  0xe5   :  { %v162_v15 = vadd.f32 %v530_v45, %v161_v14  ;;  %v200_v16 = vmax.f32 %v170_v12, 0.0 }
  0xe6   :  { %v623_v17 = vpop.f32.mrf.mxu1 }
  0xe7   :  { %v198_v19 = vmax.f32 %v162_v15, 0.0  ;;  %v210_v23 = vpack.c.bf16 %v200_v16, %v199_v20  ;;  %v183_v27 = vadd.f32 %v623_v17, %v530_v45 }
  0xe8   :  { %v174_v21 = vpop.f32.mrf.mxu1 }
  0xe9   :  { %v209_v22 = vpack.c.bf16 %v198_v19, %v197_v18  ;;  %v175_v25 = vadd.f32 %v530_v45, %v174_v21  ;;  %v203_v33 = vmax.f32 %v183_v27, 0.0 }
  0xea   :  { %v624_v24 = vpop.f32.mrf.mxu1 }
  0xeb   :  { %v186_v26 = vadd.f32 %v624_v24, %v530_v45  ;;  %641 = vmatprep.mubr.msk.bf16.mxu1 %vm232_vm1, %v209_v22  ;;  %v201_v31 = vmax.f32 %v175_v25, 0.0  ;;  %v370_v24 = vld [vmem:[%s922_s5] sm:$0x1]  ;;  %v377_v25 = vlaneseq  ;;  %s693_s5 = scalar_lea.vmem %s523_s6, 16 }
  0xec   :  { %v177_v28 = vpop.f32.mrf.mxu1  ;;  %642 = vmatmul.mubr.msk.bf16.gmra.mxu1 %vm232_vm1, %v210_v23  ;;  %p694_p0 = scmp.ne.s32.totalorder %s523_s6, %s693_s5  ;;  %p699_p2 = scmp.lt.s32.totalorder %s697_s12, %s693_s5 }
  0xed   :  { %v178_v29 = vadd.f32 %v530_v45, %v177_v28  ;;  %v204_v30 = vmax.f32 %v186_v26, 0.0  ;;  %v378_v26 = vshrl.u32 %v377_v25, 7  ;;  %v375_v28 = vpop.permute.xlu0 %374 }
  0xee   :  { %p700_p3 = por %p699_p2, %p698_p1 }
  0xef   :  { %v202_v32 = vmax.f32 %v178_v29, 0.0  ;;  %v212_v35 = vpack.c.bf16 %v204_v30, %v203_v33  ;;  %v379_v27 = vsub.s32 0, %v378_v26 }
  0xf0   :  { %p701_p4 = pnand %p700_p3, %p694_p0 }
  0xf1   :  { %v211_v34 = vpack.c.bf16 %v202_v32, %v201_v31  ;;  %v380_v29 = vrot.slane %v375_v28, %v379_v27 }
  0xf3   :  { %645 = vmatprep.mubr.msk.bf16.mxu1 %vm232_vm1, %v211_v34 }
  0xf4   :  { %646 = vmatmul.mubr.msk.bf16.gmra.mxu1 %vm232_vm1, %v212_v35 }
 0x19c   :  { %v867_v39 = vpop.f32.mrf.mxu1 }
 0x19d   :  { %v300_v17 = vadd.f32 %v867_v39, %v539_v53 }
 0x19e   :  { %v869_v40 = vpop.f32.mrf.mxu1 }
 0x19f   :  { %v356_v19 = vmax.f32 %v300_v17, 0.0  ;;  %v292_v21 = vadd.f32 %v539_v53, %v869_v40 }
 0x1a0   :  { %v636_v41 = vpop.f32.mrf.mxu1 }
 0x1a1   :  { %v303_v15 = vadd.f32 %v636_v41, %v539_v53  ;;  %v354_v23 = vmax.f32 %v292_v21, 0.0 }
 0x1a2   :  { %v871_v42 = vpop.f32.mrf.mxu1 }
 0x1a3   :  { %v357_v18 = vmax.f32 %v303_v15, 0.0  ;;  %v295_v20 = vadd.f32 %v539_v53, %v871_v42 }
 0x1a4   :  { %v639_v43 = vpop.f32.mrf.mxu1 }
 0x1a5   :  { %v316_v9 = vadd.f32 %v639_v43, %v539_v53  ;;  %v355_v22 = vmax.f32 %v295_v20, 0.0 }
 0x1a6   :  { %v307_v44 = vpop.f32.mrf.mxu1 }
 0x1a7   :  { %v360_v11 = vmax.f32 %v316_v9, 0.0  ;;  %v308_v13 = vadd.f32 %v539_v53, %v307_v44 }
 0x1a8   :  { %v640_v45 = vpop.f32.mrf.mxu1 }
 0x1a9   :  { %v319_v7 = vadd.f32 %v640_v45, %v539_v53  ;;  %v358_v16 = vmax.f32 %v308_v13, 0.0 }
 0x1aa   :  { %v310_v46 = vpop.f32.mrf.mxu1 }
 0x1ab   :  { %v361_v10 = vmax.f32 %v319_v7, 0.0  ;;  %v311_v12 = vadd.f32 %v539_v53, %v310_v46 }
 0x1ac   :  { %v643_v47 = vpop.f32.mrf.mxu1 }
 0x1ad   :  { %v332_v1 = vadd.f32 %v643_v47, %v539_v53  ;;  %v359_v14 = vmax.f32 %v311_v12, 0.0 }
 0x1ae   :  { %v323_v48 = vpop.f32.mrf.mxu1 }
 0x1af   :  { %v364_v3 = vmax.f32 %v332_v1, 0.0  ;;  %v324_v5 = vadd.f32 %v539_v53, %v323_v48 }
 0x1b0   :  { %v644_v49 = vpop.f32.mrf.mxu1 }
 0x1b1   :  { %v335_v63 = vadd.f32 %v644_v49, %v539_v53  ;;  %v362_v8 = vmax.f32 %v324_v5, 0.0 }
 0x1b2   :  { %v326_v50 = vpop.f32.mrf.mxu1 }
 0x1b3   :  { %v365_v2 = vmax.f32 %v335_v63, 0.0  ;;  %v327_v4 = vadd.f32 %v539_v53, %v326_v50 }
 0x1b4   :  { %v647_v51 = vpop.f32.mrf.mxu1 }
 0x1b5   :  { %v348_v56 = vadd.f32 %v647_v51, %v539_v53  ;;  %v363_v6 = vmax.f32 %v327_v4, 0.0 }
 0x1b6   :  { %v339_v52 = vpop.f32.mrf.mxu1 }
 0x1b7   :  { %v368_v59 = vmax.f32 %v348_v56, 0.0  ;;  %v340_v61 = vadd.f32 %v539_v53, %v339_v52 }
 0x1b8   :  { %v648_v54 = vpop.f32.mrf.mxu1 }
 0x1b9   :  { %v351_v55 = vadd.f32 %v648_v54, %v539_v53  ;;  %v366_v0 = vmax.f32 %v340_v61, 0.0 }
 0x1ba   :  { %v342_v58 = vpop.f32.mrf.mxu1 }
 0x1bb   :  { %v369_v57 = vmax.f32 %v351_v55, 0.0  ;;  %v343_v60 = vadd.f32 %v539_v53, %v342_v58 }
 0x1bd   :  { %650 = vmatpush3.xpose.msk.msra.mxu0 %vm67_vm0, %v369_v57  ;;  %v367_v62 = vmax.f32 %v343_v60, 0.0 }
 0x1be   :  { %651 = vmatprep.subr.mxu0 %v715_v36 }
 0x1c1   :  { %652 = vmatpush3.xpose.msk.msra.mxu0 %vm67_vm0, %v368_v59 }
 0x1c2   :  { %653 = vmatprep.subr.mxu0 %v715_v36 }
 0x1c5   :  { %654 = vmatpush3.xpose.msk.msra.mxu0 %vm67_vm0, %v367_v62 }
 0x1c6   :  { %655 = vmatprep.subr.mxu0 %v715_v36 }
 0x1c9   :  { %656 = vmatpush3.xpose.msk.msra.mxu0 %vm67_vm0, %v366_v0 }
 0x1ca   :  { %657 = vmatprep.subr.mxu0 %v715_v36 }
 0x1cd   :  { %658 = vmatpush3.xpose.msk.msra.mxu0 %vm67_vm0, %v365_v2 }
 0x1ce   :  { %659 = vmatprep.subr.mxu0 %v715_v36 }
 0x1d1   :  { %660 = vmatpush3.xpose.msk.msra.mxu0 %vm67_vm0, %v364_v3 }
 0x1d2   :  { %661 = vmatprep.subr.mxu0 %v715_v36 }
 0x1d5   :  { %662 = vmatpush3.xpose.msk.msra.mxu0 %vm67_vm0, %v363_v6 }
 0x1d6   :  { %663 = vmatprep.subr.mxu0 %v715_v36 }
 0x1d9   :  { %664 = vmatpush3.xpose.msk.msra.mxu0 %vm67_vm0, %v362_v8 }
 0x1da   :  { %665 = vmatprep.subr.mxu0 %v715_v36 }
 0x1dd   :  { %666 = vmatpush3.xpose.msk.msra.mxu0 %vm67_vm0, %v361_v10 }
 0x1de   :  { %667 = vmatprep.subr.mxu0 %v715_v36 }
 0x1e1   :  { %668 = vmatpush3.xpose.msk.msra.mxu0 %vm67_vm0, %v360_v11 }
 0x1e2   :  { %669 = vmatprep.subr.mxu0 %v715_v36 }
 0x1e5   :  { %670 = vmatpush3.xpose.msk.msra.mxu0 %vm67_vm0, %v359_v14 }
 0x1e6   :  { %671 = vmatprep.subr.mxu0 %v715_v36 }
 0x1e9   :  { %672 = vmatpush3.xpose.msk.msra.mxu0 %vm67_vm0, %v358_v16 }
 0x1ea   :  { %673 = vmatprep.subr.mxu0 %v715_v36 }
 0x1ed   :  { %674 = vmatpush3.xpose.msk.msra.mxu0 %vm67_vm0, %v357_v18 }
 0x1ee   :  { %675 = vmatprep.subr.mxu0 %v715_v36 }
 0x1f1   :  { %676 = vmatpush3.xpose.msk.msra.mxu0 %vm67_vm0, %v356_v19 }
 0x1f2   :  { %677 = vmatprep.subr.mxu0 %v715_v36 }
 0x1f5   :  { %678 = vmatpush3.xpose.msk.msra.mxu0 %vm67_vm0, %v355_v22 }
 0x1f6   :  { %679 = vmatprep.subr.mxu0 %v715_v36  ;;  %v510_v36 = vand.u32 127, %v377_v25 }
 0x1f8   :  { %vm513_vm3 = vcmp.lt.s32.totalorder %v510_v36, 8 }
 0x1f9   :  { %680 = vmatpush3.xpose.msk.msra.mxu0 %vm67_vm0, %v354_v23 }
 0x1fc   :  { %682 = vmatmul.mubr.msk.f32.vlgmr.msra.gmra.mxu0 %vm67_vm0, %v370_v24 }
 0x2bc   :  { %v498_v30 = vpop.f32.mrf.mxu0 }
 0x2bd   :  { %v499_v31 = vadd.f32 %v498_v30, %v380_v29 }
 0x2be   :  { %v683_v32 = vpop.f32.mrf.mxu0 }
 0x2bf   :  { %v565_v33 = vmul.f32 -1.442695, %v499_v31 }
 0x2c1   :  { %689 = vpow2.f32 %v565_v33 }
 0x2ce   :  { %v690_v34 = vpop.eup %689 }
 0x2cf   :  { %v505_v35 = vadd.f32 1.0, %v690_v34 }
 0x2d1   :  { %691 = vrcp.f32 %v505_v35 }
 0x2de   :  { %v692_v37 = vpop.eup %691 }
 0x2df   :  { %v514_v38 = vsel %vm513_vm3, %v692_v37, 0.0 }
 0x2e0   :  { %515 = vst [vmem:[#allocation3] sm:$0x1] %v514_v38 }
 0x2e1   :  { %704 = shalt.err (!%p701_p4)
}
 0x2e2   :  { %525 = dma.vmem_to_hbm [thread:$0]  %s523_s6, 16, %s924_s7, [#allocation4]  }
 0x2e3   :  { %713 = dma.done.wait [#allocation4], 16  }
 0x2e4   :  { %714 = vsyncadd [#allocation4], 4294967280 }
 0x2e5   :  { %529 = vsyncpa [#allocation4], 1 }

</bundles_post_ra>
